<compile_context>
chip_gen: v6e
topology: v6e:2x2x1
jax: 0.10.0
libtpu: 0.0.40
codegen_flags: <defaults>
</compile_context>

<pallas_src>
import math

import jax
import jax.numpy as jnp
from jax.experimental import pallas as pl
from jax.experimental.pallas import tpu as pltpu


def cdf_kernel(obs_ref, w1_ref, b1_ref, w2_ref, b2_ref, w3p_ref, b3_ref,
               out_ref):
    # obs block: (TB, D); weights/biases: full arrays resident in VMEM.
    x = obs_ref[...]

    # Hidden layer 1: Linear + ReLU (MXU, f32 accumulation).
    h1 = jnp.dot(x, w1_ref[...], preferred_element_type=jnp.float32) + b1_ref[...]
    h1 = jnp.maximum(h1, 0.0)

    # Hidden layer 2: Linear + ReLU.
    h2 = jnp.dot(h1.astype(w2_ref.dtype), w2_ref[...],
                 preferred_element_type=jnp.float32) + b2_ref[...]
    h2 = jnp.maximum(h2, 0.0)

    # Output layer (out_features = 1), computed lane-dense:
    #   w3p is (8, H2) with w3^T in row 0 and zero padding in rows 1..7.
    #   Contract both operands on their last (feature/lane) axis (q @ k^T
    #   pattern) -> (8, TB); take row 0 -> (1, TB) already in output layout.
    yt = jax.lax.dot_general(
        w3p_ref[...], h2.astype(w3p_ref.dtype),
        dimension_numbers=(((1,), (1,)), ((), ())),
        preferred_element_type=jnp.float32)                # (8, TB)
    y = yt[0:1, :] + b3_ref[...]                           # (1, TB), f32

    # Output activation: numerically stable sigmoid (kept in f32, exp -> EUP).
    t = jnp.exp(-jnp.abs(y))
    out_ref[...] = jnp.where(y >= 0.0, 1.0 / (1.0 + t), t / (1.0 + t))


def cdf_forward(obs, params, *, block_b=1024, use_bf16=False):
    """obs: (B, obs_dim) f32.  Returns (B, 1) f32 (same as the PyTorch module)."""
    w1, b1, w2, b2, w3, b3 = params
    B, D = obs.shape
    H1 = w1.shape[1]
    H2 = w2.shape[1]
    assert block_b % 128 == 0, "block_b must be a multiple of 128 (lane-dense out)"

    # Layout plumbing for the last layer: w3 (H2, 1) -> row (1, H2), padded to
    # 8 sublanes so the in-kernel contraction has a well-formed M dimension.
    w3_row = w3.reshape(1, H2)
    w3p = jnp.concatenate([w3_row, jnp.zeros((7, H2), w3.dtype)], axis=0)

    if use_bf16:
        # Feed the MXU bf16 operands; accumulation stays f32 inside the kernel,
        # biases and all elementwise math stay f32.
        obs_in = obs.astype(jnp.bfloat16)
        w1c = w1.astype(jnp.bfloat16)
        w2c = w2.astype(jnp.bfloat16)
        w3c = w3p.astype(jnp.bfloat16)
    else:
        obs_in, w1c, w2c, w3c = obs, w1, w2, w3p

    b1c = b1.astype(jnp.float32)
    b2c = b2.astype(jnp.float32)
    b3c = b3.astype(jnp.float32)

    # Batch tile: full batch in one step if it fits, otherwise block_b rows/step.
    tb = B if B <= block_b else block_b
    grid = (pl.cdiv(B, tb),)

    flops = 2 * B * (D * H1 + H1 * H2 + H2)
    bytes_accessed = (
        obs_in.size * obs_in.dtype.itemsize
        + sum(int(a.size) * a.dtype.itemsize for a in (w1c, b1c, w2c, b2c, w3c, b3c))
        + B * 4)

    out = pl.pallas_call(
        cdf_kernel,
        out_shape=jax.ShapeDtypeStruct((1, B), jnp.float32),
        grid=grid,
        in_specs=[
            pl.BlockSpec((tb, D), lambda i: (i, 0)),    # obs: blocked over batch
            pl.BlockSpec((D, H1), lambda i: (0, 0)),    # w1: resident
            pl.BlockSpec((1, H1), lambda i: (0, 0)),    # b1
            pl.BlockSpec((H1, H2), lambda i: (0, 0)),   # w2
            pl.BlockSpec((1, H2), lambda i: (0, 0)),    # b2
            pl.BlockSpec((8, H2), lambda i: (0, 0)),    # w3 (row, padded to 8)
            pl.BlockSpec((1, 1), lambda i: (0, 0)),     # b3
        ],
        out_specs=pl.BlockSpec((1, tb), lambda i: (0, i)),  # lane-dense output
        compiler_params=pltpu.CompilerParams(
            dimension_semantics=("parallel",)),
        cost_estimate=pl.CostEstimate(
            flops=int(flops),
            transcendentals=int(B),
            bytes_accessed=int(bytes_accessed)),
    )(obs_in, w1c, b1c, w2c, b2c, w3c, b3c)

    # (1, B) row-major -> (B, 1): free reshape, matches the module's output.
    return out.reshape(B, 1)


def init_linear(key, fan_in, fan_out):
    """Deterministic init mimicking torch.nn.Linear default (U(+-1/sqrt(fan_in)))."""
    kw, kb = jax.random.split(key)
    bound = 1.0 / math.sqrt(fan_in)
    # Stored as (in, out) so the kernel computes x @ W (== x @ W_torch.T).
    w = jax.random.uniform(kw, (fan_in, fan_out), jnp.float32, -bound, bound)
    b = jax.random.uniform(kb, (1, fan_out), jnp.float32, -bound, bound)
    return w, b


def reference_forward(obs, params):
    """Pure-JAX reference (same stable sigmoid formula)."""
    w1, b1, w2, b2, w3, b3 = params
    h = jnp.maximum(obs @ w1 + b1, 0.0)
    h = jnp.maximum(h @ w2 + b2, 0.0)
    y = h @ w3 + b3                                   # (B, 1)
    t = jnp.exp(-jnp.abs(y))
    return jnp.where(y >= 0.0, 1.0 / (1.0 + t), t / (1.0 + t))


if __name__ == "__main__":
    # Module hyperparameters (synthetic, consistent with __init__ kwargs):
    #   obsv_dim = 16, value_hidden_sizes = (32, 32),
    #   value_hidden_activation = relu, output activation = sigmoid.
    obs_dim = 16
    hidden_sizes = (32, 32)
    batch = 256  # small, but exercises a 2-step batch grid with block_b=128

    key = jax.random.PRNGKey(0)
    k_obs, k1, k2, k3 = jax.random.split(key, 4)

    obs = jax.random.normal(k_obs, (batch, obs_dim), jnp.float32)

    w1, b1 = init_linear(k1, obs_dim, hidden_sizes[0])
    w2, b2 = init_linear(k2, hidden_sizes[0], hidden_sizes[1])
    w3, b3 = init_linear(k3, hidden_sizes[1], 1)
    params = (w1, b1, w2, b2, w3, b3)

    ref = reference_forward(obs, params)

    # Single-step path (whole batch in one tile).
    out_single = jax.block_until_ready(cdf_forward(obs, params, block_b=1024))
    assert out_single.shape == (batch, 1), out_single.shape
    assert jnp.allclose(out_single, ref, atol=1e-5, rtol=1e-5), (out_single[:4], ref[:4])

    # f32 path (tight tolerance), blocked over batch (grid = 2).
    out = jax.block_until_ready(cdf_forward(obs, params, block_b=128))
    assert out.shape == (batch, 1), out.shape
    assert jnp.allclose(out, ref, atol=1e-5, rtol=1e-5), (out[:4], ref[:4])

    # bf16-MXU path (f32 accumulation), looser tolerance.
    out_bf16 = jax.block_until_ready(
        cdf_forward(obs, params, block_b=128, use_bf16=True))
    assert out_bf16.shape == (batch, 1), out_bf16.shape
    assert jnp.allclose(out_bf16, ref, atol=3e-2, rtol=3e-2), (out_bf16[:4], ref[:4])

    print("KERNEL_OK")
</pallas_src>

<mosaic_0001>
module attributes {stable_mosaic.version = 11 : i64} {
  func.func @cdf_kernel(%arg0: i32, %arg1: memref<256x16xf32, #tpu.memory_space<vmem>>, %arg2: memref<16x32xf32, #tpu.memory_space<vmem>>, %arg3: memref<1x32xf32, #tpu.memory_space<vmem>>, %arg4: memref<32x32xf32, #tpu.memory_space<vmem>>, %arg5: memref<1x32xf32, #tpu.memory_space<vmem>>, %arg6: memref<8x32xf32, #tpu.memory_space<vmem>>, %arg7: memref<1x1xf32, #tpu.memory_space<vmem>>, %arg8: memref<1x256xf32, #tpu.memory_space<vmem>>) attributes {dimension_semantics = [#tpu.dimension_semantics<parallel>], iteration_bounds = array<i64: 1>, scalar_prefetch = 0 : i64, scratch_operands = 0 : i64, tpu.core_type = #tpu.core_type<tc>, window_params = [{transform_indices = @transform_0, window_bounds = array<i64: 256, 16>}, {pipeline_mode = #tpu.pipeline_mode<synchronous>, transform_indices = @transform_1, window_bounds = array<i64: 16, 32>}, {pipeline_mode = #tpu.pipeline_mode<synchronous>, transform_indices = @transform_2, window_bounds = array<i64: 1, 32>}, {pipeline_mode = #tpu.pipeline_mode<synchronous>, transform_indices = @transform_3, window_bounds = array<i64: 32, 32>}, {pipeline_mode = #tpu.pipeline_mode<synchronous>, transform_indices = @transform_4, window_bounds = array<i64: 1, 32>}, {pipeline_mode = #tpu.pipeline_mode<synchronous>, transform_indices = @transform_5, window_bounds = array<i64: 8, 32>}, {pipeline_mode = #tpu.pipeline_mode<synchronous>, transform_indices = @transform_6, window_bounds = array<i64: 1, 1>}, {transform_indices = @transform_7, window_bounds = array<i64: 1, 256>}]} {
    %c0 = arith.constant 0 : index
    %c0_0 = arith.constant 0 : index
    %0 = vector.load %arg1[%c0, %c0_0] : memref<256x16xf32, #tpu.memory_space<vmem>>, vector<256x16xf32>
    %c0_1 = arith.constant 0 : index
    %c0_2 = arith.constant 0 : index
    %1 = vector.load %arg2[%c0_1, %c0_2] : memref<16x32xf32, #tpu.memory_space<vmem>>, vector<16x32xf32>
    %cst = arith.constant dense<0.000000e+00> : vector<256x32xf32>
    %2 = tpu.matmul %0, %1, %cst {dimension_numbers = #tpu.dot_dimension_numbers<[1], [0], [0], [1], [0, 0, 1, 1], [], []>} : vector<256x16xf32>, vector<16x32xf32>, vector<256x32xf32> -> vector<256x32xf32>
    %c0_3 = arith.constant 0 : index
    %c0_4 = arith.constant 0 : index
    %3 = vector.load %arg3[%c0_3, %c0_4] : memref<1x32xf32, #tpu.memory_space<vmem>>, vector<1x32xf32>
    %4 = vector.broadcast %3 : vector<1x32xf32> to vector<256x32xf32>
    %5 = arith.addf %2, %4 : vector<256x32xf32>
    %cst_5 = arith.constant 0.000000e+00 : f32
    %6 = vector.broadcast %cst_5 : f32 to vector<256x32xf32>
    %7 = arith.maximumf %5, %6 : vector<256x32xf32>
    %c0_6 = arith.constant 0 : index
    %c0_7 = arith.constant 0 : index
    %8 = vector.load %arg4[%c0_6, %c0_7] : memref<32x32xf32, #tpu.memory_space<vmem>>, vector<32x32xf32>
    %cst_8 = arith.constant dense<0.000000e+00> : vector<256x32xf32>
    %9 = tpu.matmul %7, %8, %cst_8 {dimension_numbers = #tpu.dot_dimension_numbers<[1], [0], [0], [1], [0, 0, 1, 1], [], []>} : vector<256x32xf32>, vector<32x32xf32>, vector<256x32xf32> -> vector<256x32xf32>
    %c0_9 = arith.constant 0 : index
    %c0_10 = arith.constant 0 : index
    %10 = vector.load %arg5[%c0_9, %c0_10] : memref<1x32xf32, #tpu.memory_space<vmem>>, vector<1x32xf32>
    %11 = vector.broadcast %10 : vector<1x32xf32> to vector<256x32xf32>
    %12 = arith.addf %9, %11 : vector<256x32xf32>
    %cst_11 = arith.constant 0.000000e+00 : f32
    %13 = vector.broadcast %cst_11 : f32 to vector<256x32xf32>
    %14 = arith.maximumf %12, %13 : vector<256x32xf32>
    %c0_12 = arith.constant 0 : index
    %c0_13 = arith.constant 0 : index
    %15 = vector.load %arg6[%c0_12, %c0_13] : memref<8x32xf32, #tpu.memory_space<vmem>>, vector<8x32xf32>
    %cst_14 = arith.constant dense<0.000000e+00> : vector<8x256xf32>
    %16 = tpu.matmul %15, %14, %cst_14 {dimension_numbers = #tpu.dot_dimension_numbers<[1], [1], [0], [0], [0, 0, 1, 0], [], []>} : vector<8x32xf32>, vector<256x32xf32>, vector<8x256xf32> -> vector<8x256xf32>
    %17 = vector.extract_strided_slice %16 {offsets = [0, 0], sizes = [1, 256], strides = [1, 1]} : vector<8x256xf32> to vector<1x256xf32>
    %c0_15 = arith.constant 0 : index
    %c0_16 = arith.constant 0 : index
    %18 = vector.load %arg7[%c0_15, %c0_16] : memref<1x1xf32, #tpu.memory_space<vmem>>, vector<1x1xf32>
    %19 = vector.broadcast %18 : vector<1x1xf32> to vector<1x256xf32>
    %20 = arith.addf %17, %19 : vector<1x256xf32>
    %21 = math.absf %20 : vector<1x256xf32>
    %cst_17 = arith.constant 0.000000e+00 : f32
    %22 = vector.broadcast %cst_17 : f32 to vector<1x256xf32>
    %23 = arith.subf %22, %21 : vector<1x256xf32>
    %24 = math.exp %23 : vector<1x256xf32>
    %cst_18 = arith.constant 0.000000e+00 : f32
    %25 = vector.broadcast %cst_18 : f32 to vector<1x256xf32>
    %26 = arith.cmpf oge, %20, %25 : vector<1x256xf32>
    %cst_19 = arith.constant 1.000000e+00 : f32
    %27 = vector.broadcast %cst_19 : f32 to vector<1x256xf32>
    %28 = arith.addf %27, %24 : vector<1x256xf32>
    %cst_20 = arith.constant 1.000000e+00 : f32
    %29 = vector.broadcast %cst_20 : f32 to vector<1x256xf32>
    %30 = arith.divf %29, %28 : vector<1x256xf32>
    %cst_21 = arith.constant 1.000000e+00 : f32
    %31 = vector.broadcast %cst_21 : f32 to vector<1x256xf32>
    %32 = arith.addf %31, %24 : vector<1x256xf32>
    %33 = arith.divf %24, %32 : vector<1x256xf32>
    %34 = arith.select %26, %30, %33 : vector<1x256xi1>, vector<1x256xf32>
    %c0_22 = arith.constant 0 : index
    %c0_23 = arith.constant 0 : index
    %35 = vector.load %arg8[%c0_22, %c0_23] : memref<1x256xf32, #tpu.memory_space<vmem>>, vector<1x256xf32>
    tpu.vector_store %arg8[%c0_22, %c0_23], %34 {strides = array<i32>} : memref<1x256xf32, #tpu.memory_space<vmem>>, vector<1x256xf32>,
    return
  }
  func.func @transform_0(%arg0: i32) -> (i32, i32) {
    %c0_i32 = arith.constant 0 : i32
    %c0_i32_0 = arith.constant 0 : i32
    return %arg0, %c0_i32 : i32, i32
  }
  func.func @transform_1(%arg0: i32) -> (i32, i32) {
    %c0_i32 = arith.constant 0 : i32
    %c0_i32_0 = arith.constant 0 : i32
    %c0_i32_1 = arith.constant 0 : i32
    return %c0_i32, %c0_i32_0 : i32, i32
  }
  func.func @transform_2(%arg0: i32) -> (i32, i32) {
    %c0_i32 = arith.constant 0 : i32
    %c0_i32_0 = arith.constant 0 : i32
    %c0_i32_1 = arith.constant 0 : i32
    return %c0_i32, %c0_i32_0 : i32, i32
  }
  func.func @transform_3(%arg0: i32) -> (i32, i32) {
    %c0_i32 = arith.constant 0 : i32
    %c0_i32_0 = arith.constant 0 : i32
    %c0_i32_1 = arith.constant 0 : i32
    return %c0_i32, %c0_i32_0 : i32, i32
  }
  func.func @transform_4(%arg0: i32) -> (i32, i32) {
    %c0_i32 = arith.constant 0 : i32
    %c0_i32_0 = arith.constant 0 : i32
    %c0_i32_1 = arith.constant 0 : i32
    return %c0_i32, %c0_i32_0 : i32, i32
  }
  func.func @transform_5(%arg0: i32) -> (i32, i32) {
    %c0_i32 = arith.constant 0 : i32
    %c0_i32_0 = arith.constant 0 : i32
    %c0_i32_1 = arith.constant 0 : i32
    return %c0_i32, %c0_i32_0 : i32, i32
  }
  func.func @transform_6(%arg0: i32) -> (i32, i32) {
    %c0_i32 = arith.constant 0 : i32
    %c0_i32_0 = arith.constant 0 : i32
    %c0_i32_1 = arith.constant 0 : i32
    return %c0_i32, %c0_i32_0 : i32, i32
  }
  func.func @transform_7(%arg0: i32) -> (i32, i32) {
    %c0_i32 = arith.constant 0 : i32
    %c0_i32_0 = arith.constant 0 : i32
    return %c0_i32, %arg0 : i32, i32
  }
}

</mosaic_0001>

<bundles_post_ra>
// kernel: tpu_custom_call.1
= control target key start
LH: loop header
LB: loop body
LE: loop exit
PB: predicated region body
PF: predicated region fallthrough
CT: control target
= control target key end

     0   :  { %s1761_s0 = inlined_call_operand.vmem [shape: f32[256,16], index: 0, kind: input, shape index: {}]   ;;  %s1762_s1 = inlined_call_operand.vmem [shape: f32[16,32], index: 1, kind: input, shape index: {}]   ;;  %s1763_s2 = inlined_call_operand.vmem [shape: f32[1,32], index: 2, kind: input, shape index: {}]   ;;  %s1764_s3 = inlined_call_operand.vmem [shape: f32[32,32], index: 3, kind: input, shape index: {}]   ;;  %s1765_s4 = inlined_call_operand.vmem [shape: f32[1,32], index: 4, kind: input, shape index: {}]   ;;  %s1766_s5 = inlined_call_operand.vmem [shape: f32[8,32], index: 5, kind: input, shape index: {}]   ;;  %s1767_s6 = inlined_call_operand.<no memory space> [shape: f32[1,1], index: 6, kind: input, shape index: {}]   ;;  %s1768_s7 = inlined_call_operand.hbm [shape: f32[1,256], index: 7, kind: output, shape index: {}]  }
   0x1   :  { %v12_v0 = vstv %s1767_s6 }
   0x2   :  { %13 = vst [vmem:[#allocation2] sm:$0x1] %v12_v0 }
   0x3   :  { %v62_v1 = vld [vmem:[%s1762_s1 + $0x8] sm:$0xff]  ;;  %v61_v2 = vld [vmem:[%s1762_s1] sm:$0xff]  ;;  %vm70_vm0 = vcmask 130048   ;;  %v31_v5 = vld [vmem:[%s1761_s0 + $0x10] sm:$0xff] }
   0x4   :  { %v29_v3 = vld [vmem:[%s1761_s0] sm:$0xff]  ;;  %1232 = vmatprep.subr.mxu0 %v62_v1  ;;  %v30_v4 = vld [vmem:[%s1761_s0 + $0x8] sm:$0xff]  ;;  %v32_v6 = vld [vmem:[%s1761_s0 + $0x18] sm:$0xff] }
   0x5   :  { %1236 = vmatprep.mubr.msk.f32.mxu0 %vm70_vm0, %v29_v3  ;;  %1233 = vmatpush3.msra.mxu0 %v62_v1  ;;  %v33_v7 = vld [vmem:[%s1761_s0 + $0x20] sm:$0xff]  ;;  %v34_v8 = vld [vmem:[%s1761_s0 + $0x28] sm:$0xff]  ;;  %v35_v9 = vld [vmem:[%s1761_s0 + $0x30] sm:$0xff] }
   0x6   :  { %1234 = vmatprep.subr.mxu0 %v61_v2 }
   0x7   :  { %1235 = vmatpush3.msra.mxu0 %v61_v2 }
   0x8   :  { %1237 = vmatmul.mubr.msk.f32.vlgmr.msra.gmra.mxu0 %vm70_vm0, %v30_v4 }
   0x9   :  { %1239 = vmatprep.mubr.msk.f32.mxu0 %vm70_vm0, %v31_v5 }
   0xc   :  { %1240 = vmatmul.mubr.msk.f32.gmra.mxu0 %vm70_vm0, %v32_v6 }
   0xd   :  { %1242 = vmatprep.mubr.msk.f32.mxu0 %vm70_vm0, %v33_v7 }
   0xe   :  { %14 = vsyncpa [#allocation4], 0  ;;  %v36_v10 = vld [vmem:[%s1761_s0 + $0x38] sm:$0xff]  ;;  %v37_v11 = vld [vmem:[%s1761_s0 + $0x40] sm:$0xff]  ;;  %vm435_vm1 = vcmask 261120  }
   0xf   :  { %v38_v12 = vld [vmem:[%s1761_s0 + $0x48] sm:$0xff]  ;;  %v39_v13 = vld [vmem:[%s1761_s0 + $0x50] sm:$0xff]  ;;  %v40_v14 = vld [vmem:[%s1761_s0 + $0x58] sm:$0xff] }
  0x10   :  { %1243 = vmatmul.mubr.msk.f32.gmra.mxu0 %vm70_vm0, %v34_v8  ;;  %v41_v15 = vld [vmem:[%s1761_s0 + $0x60] sm:$0xff]  ;;  %v42_v16 = vld [vmem:[%s1761_s0 + $0x68] sm:$0xff]  ;;  %v43_v17 = vld [vmem:[%s1761_s0 + $0x70] sm:$0xff] }
  0x11   :  { %1245 = vmatprep.mubr.msk.f32.mxu0 %vm70_vm0, %v35_v9  ;;  %v44_v18 = vld [vmem:[%s1761_s0 + $0x78] sm:$0xff]  ;;  %v45_v19 = vld [vmem:[%s1761_s0 + $0x80] sm:$0xff]  ;;  %v46_v20 = vld [vmem:[%s1761_s0 + $0x88] sm:$0xff] }
  0x12   :  { %v47_v21 = vld [vmem:[%s1761_s0 + $0x90] sm:$0xff]  ;;  %v48_v22 = vld [vmem:[%s1761_s0 + $0x98] sm:$0xff]  ;;  %v49_v23 = vld [vmem:[%s1761_s0 + $0xa0] sm:$0xff] }
  0x13   :  { %v50_v24 = vld [vmem:[%s1761_s0 + $0xa8] sm:$0xff]  ;;  %v51_v25 = vld [vmem:[%s1761_s0 + $0xb0] sm:$0xff]  ;;  %v52_v26 = vld [vmem:[%s1761_s0 + $0xb8] sm:$0xff] }
  0x14   :  { %1246 = vmatmul.mubr.msk.f32.gmra.mxu0 %vm70_vm0, %v36_v10  ;;  %v53_v27 = vld [vmem:[%s1761_s0 + $0xc0] sm:$0xff]  ;;  %v54_v28 = vld [vmem:[%s1761_s0 + $0xc8] sm:$0xff]  ;;  %v55_v29 = vld [vmem:[%s1761_s0 + $0xd0] sm:$0xff] }
  0x15   :  { %1248 = vmatprep.mubr.msk.f32.mxu0 %vm70_vm0, %v37_v11  ;;  %v56_v30 = vld [vmem:[%s1761_s0 + $0xd8] sm:$0xff]  ;;  %v57_v31 = vld [vmem:[%s1761_s0 + $0xe0] sm:$0xff]  ;;  %v58_v32 = vld [vmem:[%s1761_s0 + $0xe8] sm:$0xff] }
  0x16   :  { %v59_v33 = vld [vmem:[%s1761_s0 + $0xf0] sm:$0xff]  ;;  %v60_v34 = vld [vmem:[%s1761_s0 + $0xf8] sm:$0xff]  ;;  %v425_v37 = vld [vmem:[%s1764_s3 + $0x8] sm:$0xff] }
  0x17   :  { %v427_v35 = vld [vmem:[%s1764_s3 + $0x18] sm:$0xff]  ;;  %v426_v36 = vld [vmem:[%s1764_s3 + $0x10] sm:$0xff]  ;;  %v424_v38 = vld [vmem:[%s1764_s3] sm:$0xff] }
  0x18   :  { %1249 = vmatmul.mubr.msk.f32.gmra.mxu0 %vm70_vm0, %v38_v12  ;;  %1284 = vmatprep.subr.mxu1 %v427_v35  ;;  %v1569_v39 = vld [vmem:[%s1763_s2] ss:$0 sm:$0xff] }
  0x19   :  { %1251 = vmatprep.mubr.msk.f32.mxu0 %vm70_vm0, %v39_v13  ;;  %1285 = vmatpush3.msra.mxu1 %v427_v35 }
  0x1a   :  { %1286 = vmatprep.subr.mxu1 %v426_v36 }
  0x1b   :  { %1287 = vmatpush3.msra.mxu1 %v426_v36 }
  0x1c   :  { %1252 = vmatmul.mubr.msk.f32.gmra.mxu0 %vm70_vm0, %v40_v14  ;;  %1288 = vmatprep.subr.mxu1 %v425_v37 }
  0x1d   :  { %1254 = vmatprep.mubr.msk.f32.mxu0 %vm70_vm0, %v41_v15  ;;  %1289 = vmatpush3.msra.mxu1 %v425_v37 }
  0x1e   :  { %1290 = vmatprep.subr.mxu1 %v424_v38 }
  0x1f   :  { %1291 = vmatpush3.msra.mxu1 %v424_v38 }
  0x20   :  { %1255 = vmatmul.mubr.msk.f32.gmra.mxu0 %vm70_vm0, %v42_v16 }
  0x21   :  { %1257 = vmatprep.mubr.msk.f32.mxu0 %vm70_vm0, %v43_v17 }
  0x24   :  { %1258 = vmatmul.mubr.msk.f32.gmra.mxu0 %vm70_vm0, %v44_v18 }
  0x25   :  { %1260 = vmatprep.mubr.msk.f32.mxu0 %vm70_vm0, %v45_v19 }
  0x28   :  { %1261 = vmatmul.mubr.msk.f32.gmra.mxu0 %vm70_vm0, %v46_v20 }
  0x29   :  { %1263 = vmatprep.mubr.msk.f32.mxu0 %vm70_vm0, %v47_v21 }
  0x2c   :  { %1264 = vmatmul.mubr.msk.f32.gmra.mxu0 %vm70_vm0, %v48_v22 }
  0x2d   :  { %1266 = vmatprep.mubr.msk.f32.mxu0 %vm70_vm0, %v49_v23 }
  0x30   :  { %1267 = vmatmul.mubr.msk.f32.gmra.mxu0 %vm70_vm0, %v50_v24 }
  0x31   :  { %1269 = vmatprep.mubr.msk.f32.mxu0 %vm70_vm0, %v51_v25 }
  0x34   :  { %1270 = vmatmul.mubr.msk.f32.gmra.mxu0 %vm70_vm0, %v52_v26 }
  0x35   :  { %1272 = vmatprep.mubr.msk.f32.mxu0 %vm70_vm0, %v53_v27 }
  0x38   :  { %1273 = vmatmul.mubr.msk.f32.gmra.mxu0 %vm70_vm0, %v54_v28 }
  0x39   :  { %1275 = vmatprep.mubr.msk.f32.mxu0 %vm70_vm0, %v55_v29 }
  0x3c   :  { %1276 = vmatmul.mubr.msk.f32.gmra.mxu0 %vm70_vm0, %v56_v30 }
  0x3d   :  { %1278 = vmatprep.mubr.msk.f32.mxu0 %vm70_vm0, %v57_v31 }
  0x40   :  { %1279 = vmatmul.mubr.msk.f32.gmra.mxu0 %vm70_vm0, %v58_v32 }
  0x41   :  { %1281 = vmatprep.mubr.msk.f32.mxu0 %vm70_vm0, %v59_v33 }
  0x44   :  { %1282 = vmatmul.mubr.msk.f32.gmra.mxu0 %vm70_vm0, %v60_v34 }
  0xc8   :  { %v1238_v40 = vpop.f32.mrf.mxu0 }
  0xc9   :  { %v239_v41 = vadd.f32 %v1238_v40, %v1569_v39 }
  0xca   :  { %v233_v42 = vpop.f32.mrf.mxu0 }
  0xcb   :  { %v234_v43 = vadd.f32 %v1569_v39, %v233_v42  ;;  %v393_v46 = vmax.f32 %v239_v41, 0.0 }
  0xcc   :  { %v1241_v44 = vpop.f32.mrf.mxu0 }
  0xcd   :  { %v392_v45 = vmax.f32 %v234_v43, 0.0  ;;  %v249_v47 = vadd.f32 %v1241_v44, %v1569_v39 }
  0xce   :  { %v243_v48 = vpop.f32.mrf.mxu0 }
  0xcf   :  { %v244_v49 = vadd.f32 %v1569_v39, %v243_v48  ;;  %1292 = vmatprep.mubr.msk.f32.mxu1 %vm435_vm1, %v392_v45  ;;  %v395_v52 = vmax.f32 %v249_v47, 0.0 }
  0xd0   :  { %v1244_v50 = vpop.f32.mrf.mxu0  ;;  %1293 = vmatmul.mubr.msk.f32.vlgmr.msra.gmra.mxu1 %vm435_vm1, %v393_v46 }
  0xd1   :  { %v394_v51 = vmax.f32 %v244_v49, 0.0  ;;  %v259_v53 = vadd.f32 %v1244_v50, %v1569_v39 }
  0xd2   :  { %v253_v54 = vpop.f32.mrf.mxu0 }
  0xd3   :  { %v254_v55 = vadd.f32 %v1569_v39, %v253_v54  ;;  %1295 = vmatprep.mubr.msk.f32.mxu1 %vm435_vm1, %v394_v51  ;;  %v397_v58 = vmax.f32 %v259_v53, 0.0 }
  0xd4   :  { %v1247_v56 = vpop.f32.mrf.mxu0  ;;  %1296 = vmatmul.mubr.msk.f32.gmra.mxu1 %vm435_vm1, %v395_v52 }
  0xd5   :  { %v396_v57 = vmax.f32 %v254_v55, 0.0  ;;  %v269_v59 = vadd.f32 %v1247_v56, %v1569_v39 }
  0xd6   :  { %v263_v60 = vpop.f32.mrf.mxu0 }
  0xd7   :  { %v264_v61 = vadd.f32 %v1569_v39, %v263_v60  ;;  %1298 = vmatprep.mubr.msk.f32.mxu1 %vm435_vm1, %v396_v57  ;;  %v399_v0 = vmax.f32 %v269_v59, 0.0 }
  0xd8   :  { %v1250_v62 = vpop.f32.mrf.mxu0  ;;  %1299 = vmatmul.mubr.msk.f32.gmra.mxu1 %vm435_vm1, %v397_v58 }
  0xd9   :  { %v398_v63 = vmax.f32 %v264_v61, 0.0  ;;  %v279_v1 = vadd.f32 %v1250_v62, %v1569_v39 }
  0xda   :  { %v273_v2 = vpop.f32.mrf.mxu0 }
  0xdb   :  { %v274_v3 = vadd.f32 %v1569_v39, %v273_v2  ;;  %1301 = vmatprep.mubr.msk.f32.mxu1 %vm435_vm1, %v398_v63  ;;  %v401_v6 = vmax.f32 %v279_v1, 0.0 }
  0xdc   :  { %v1253_v4 = vpop.f32.mrf.mxu0  ;;  %1302 = vmatmul.mubr.msk.f32.gmra.mxu1 %vm435_vm1, %v399_v0 }
  0xdd   :  { %v400_v5 = vmax.f32 %v274_v3, 0.0  ;;  %v289_v7 = vadd.f32 %v1253_v4, %v1569_v39 }
  0xde   :  { %v283_v8 = vpop.f32.mrf.mxu0 }
  0xdf   :  { %v284_v9 = vadd.f32 %v1569_v39, %v283_v8  ;;  %1304 = vmatprep.mubr.msk.f32.mxu1 %vm435_vm1, %v400_v5  ;;  %v403_v12 = vmax.f32 %v289_v7, 0.0 }
  0xe0   :  { %v1256_v10 = vpop.f32.mrf.mxu0  ;;  %1305 = vmatmul.mubr.msk.f32.gmra.mxu1 %vm435_vm1, %v401_v6 }
  0xe1   :  { %v402_v11 = vmax.f32 %v284_v9, 0.0  ;;  %v299_v13 = vadd.f32 %v1256_v10, %v1569_v39  ;;  %v1638_v9 = vld [vmem:[%s1766_s5] sm:$0xff] }
  0xe2   :  { %v293_v14 = vpop.f32.mrf.mxu0  ;;  %1230 = vmatprep.mubr.msk.f32.mxu0 %vm435_vm1, %v1638_v9 }
  0xe3   :  { %v294_v15 = vadd.f32 %v1569_v39, %v293_v14  ;;  %1307 = vmatprep.mubr.msk.f32.mxu1 %vm435_vm1, %v402_v11  ;;  %v405_v18 = vmax.f32 %v299_v13, 0.0 }
  0xe4   :  { %v1259_v16 = vpop.f32.mrf.mxu0  ;;  %1308 = vmatmul.mubr.msk.f32.gmra.mxu1 %vm435_vm1, %v403_v12  ;;  %v1374_v12 = vmov 0  }
  0xe5   :  { %v404_v17 = vmax.f32 %v294_v15, 0.0  ;;  %v309_v19 = vadd.f32 %v1259_v16, %v1569_v39  ;;  %1343 = vset.pattern.permute.xlu0 %v1374_v12 }
  0xe6   :  { %v303_v20 = vpop.f32.mrf.mxu0 }
  0xe7   :  { %v304_v21 = vadd.f32 %v1569_v39, %v303_v20  ;;  %1310 = vmatprep.mubr.msk.f32.mxu1 %vm435_vm1, %v404_v17  ;;  %v407_v24 = vmax.f32 %v309_v19, 0.0 }
  0xe8   :  { %v1262_v22 = vpop.f32.mrf.mxu0  ;;  %1311 = vmatmul.mubr.msk.f32.gmra.mxu1 %vm435_vm1, %v405_v18 }
  0xe9   :  { %v406_v23 = vmax.f32 %v304_v21, 0.0  ;;  %v319_v25 = vadd.f32 %v1262_v22, %v1569_v39 }
  0xea   :  { %v313_v26 = vpop.f32.mrf.mxu0 }
  0xeb   :  { %v314_v27 = vadd.f32 %v1569_v39, %v313_v26  ;;  %1313 = vmatprep.mubr.msk.f32.mxu1 %vm435_vm1, %v406_v23  ;;  %v409_v30 = vmax.f32 %v319_v25, 0.0 }
  0xec   :  { %v1265_v28 = vpop.f32.mrf.mxu0  ;;  %1314 = vmatmul.mubr.msk.f32.gmra.mxu1 %vm435_vm1, %v407_v24 }
  0xed   :  { %v408_v29 = vmax.f32 %v314_v27, 0.0  ;;  %v329_v31 = vadd.f32 %v1265_v28, %v1569_v39 }
  0xee   :  { %v323_v32 = vpop.f32.mrf.mxu0 }
  0xef   :  { %v324_v33 = vadd.f32 %v1569_v39, %v323_v32  ;;  %1316 = vmatprep.mubr.msk.f32.mxu1 %vm435_vm1, %v408_v29  ;;  %v411_v36 = vmax.f32 %v329_v31, 0.0 }
  0xf0   :  { %v1268_v34 = vpop.f32.mrf.mxu0  ;;  %1317 = vmatmul.mubr.msk.f32.gmra.mxu1 %vm435_vm1, %v409_v30 }
  0xf1   :  { %v410_v35 = vmax.f32 %v324_v33, 0.0  ;;  %v339_v37 = vadd.f32 %v1268_v34, %v1569_v39 }
  0xf2   :  { %v333_v38 = vpop.f32.mrf.mxu0 }
  0xf3   :  { %v334_v40 = vadd.f32 %v1569_v39, %v333_v38  ;;  %1319 = vmatprep.mubr.msk.f32.mxu1 %vm435_vm1, %v410_v35  ;;  %v413_v43 = vmax.f32 %v339_v37, 0.0 }
  0xf4   :  { %v1271_v41 = vpop.f32.mrf.mxu0  ;;  %1320 = vmatmul.mubr.msk.f32.gmra.mxu1 %vm435_vm1, %v411_v36 }
  0xf5   :  { %v412_v42 = vmax.f32 %v334_v40, 0.0  ;;  %v349_v44 = vadd.f32 %v1271_v41, %v1569_v39 }
  0xf6   :  { %v343_v45 = vpop.f32.mrf.mxu0 }
  0xf7   :  { %v344_v46 = vadd.f32 %v1569_v39, %v343_v45  ;;  %1322 = vmatprep.mubr.msk.f32.mxu1 %vm435_vm1, %v412_v42  ;;  %v415_v49 = vmax.f32 %v349_v44, 0.0  ;;  %v1675_v42 = vld [vmem:[%s1765_s4] ss:$0 sm:$0xff]  ;;  %s1376_s4 = smov [#allocation3]  }
  0xf8   :  { %v1274_v47 = vpop.f32.mrf.mxu0  ;;  %1323 = vmatmul.mubr.msk.f32.gmra.mxu1 %vm435_vm1, %v413_v43  ;;  %s1021_s29 = sshll.u32 %s1376_s4, 4  ;;  %s1022_s29 = int_to_ptr.vmem [resolvable:$true] %s1021_s29 }
  0xf9   :  { %v414_v48 = vmax.f32 %v344_v46, 0.0  ;;  %v359_v50 = vadd.f32 %v1274_v47, %v1569_v39  ;;  %s1352_s30 = scalar_lea.vmem %s1022_s29, 32  ;;  %p1357_p1 = scmp.lt.s32.totalorder %s1022_s29, %s1022_s29 }
  0xfa   :  { %v353_v51 = vpop.f32.mrf.mxu0  ;;  %p1353_p0 = scmp.ne.s32.totalorder %s1022_s29, %s1352_s30  ;;  %p1358_p2 = scmp.lt.s32.totalorder %s1352_s30, %s1352_s30 }
  0xfb   :  { %v354_v52 = vadd.f32 %v1569_v39, %v353_v51  ;;  %1325 = vmatprep.mubr.msk.f32.mxu1 %vm435_vm1, %v414_v48  ;;  %v417_v55 = vmax.f32 %v359_v50, 0.0 }
  0xfc   :  { %v1277_v53 = vpop.f32.mrf.mxu0  ;;  %1326 = vmatmul.mubr.msk.f32.gmra.mxu1 %vm435_vm1, %v415_v49  ;;  %p1359_p3 = por %p1358_p2, %p1357_p1 }
  0xfd   :  { %v416_v54 = vmax.f32 %v354_v52, 0.0  ;;  %v369_v56 = vadd.f32 %v1277_v53, %v1569_v39 }
  0xfe   :  { %v363_v57 = vpop.f32.mrf.mxu0  ;;  %p1360_p4 = pnand %p1359_p3, %p1353_p0 }
  0xff   :  { %v364_v58 = vadd.f32 %v1569_v39, %v363_v57  ;;  %1328 = vmatprep.mubr.msk.f32.mxu1 %vm435_vm1, %v416_v54  ;;  %v419_v61 = vmax.f32 %v369_v56, 0.0 }
 0x100   :  { %v1280_v59 = vpop.f32.mrf.mxu0  ;;  %1329 = vmatmul.mubr.msk.f32.gmra.mxu1 %vm435_vm1, %v417_v55 }
 0x101   :  { %v418_v60 = vmax.f32 %v364_v58, 0.0  ;;  %v379_v62 = vadd.f32 %v1280_v59, %v1569_v39 }
 0x102   :  { %v373_v63 = vpop.f32.mrf.mxu0 }
 0x103   :  { %v374_v0 = vadd.f32 %v1569_v39, %v373_v63  ;;  %1331 = vmatprep.mubr.msk.f32.mxu1 %vm435_vm1, %v418_v60  ;;  %v421_v3 = vmax.f32 %v379_v62, 0.0 }
 0x104   :  { %v1283_v1 = vpop.f32.mrf.mxu0  ;;  %1332 = vmatmul.mubr.msk.f32.gmra.mxu1 %vm435_vm1, %v419_v61 }
 0x105   :  { %v420_v2 = vmax.f32 %v374_v0, 0.0  ;;  %v389_v4 = vadd.f32 %v1283_v1, %v1569_v39 }
 0x106   :  { %v383_v5 = vpop.f32.mrf.mxu0 }
 0x107   :  { %v384_v6 = vadd.f32 %v1569_v39, %v383_v5  ;;  %1334 = vmatprep.mubr.msk.f32.mxu1 %vm435_vm1, %v420_v2  ;;  %v423_v8 = vmax.f32 %v389_v4, 0.0  ;;  %v960_v39 = vld [vmem:[#allocation2] sm:$0x1] }
 0x108   :  { %1335 = vmatmul.mubr.msk.f32.gmra.mxu1 %vm435_vm1, %v421_v3  ;;  %963 = vperm.xlu0 %1343, %v960_v39  }
 0x109   :  { %v422_v7 = vmax.f32 %v384_v6, 0.0 }
 0x10b   :  { %1337 = vmatprep.mubr.msk.f32.mxu1 %vm435_vm1, %v422_v7 }
 0x10c   :  { %1338 = vmatmul.mubr.msk.f32.gmra.mxu1 %vm435_vm1, %v423_v8 }
 0x190   :  { %v1642_v10 = vpop.f32.mrf.mxu1 }
 0x192   :  { %v1644_v11 = vpop.f32.mrf.mxu1 }
 0x194   :  { %v1646_v13 = vpop.f32.mrf.mxu1 }
 0x196   :  { %v1648_v14 = vpop.f32.mrf.mxu1 }
 0x198   :  { %v1650_v15 = vpop.f32.mrf.mxu1 }
 0x19a   :  { %v1652_v16 = vpop.f32.mrf.mxu1 }
 0x19c   :  { %v1654_v17 = vpop.f32.mrf.mxu1 }
 0x19e   :  { %v1656_v18 = vpop.f32.mrf.mxu1 }
 0x1a0   :  { %v1306_v19 = vpop.f32.mrf.mxu1 }
 0x1a1   :  { %v644_v5 = vadd.f32 %v1306_v19, %v1675_v42  ;;  %v634_v19 = vadd.f32 %v1654_v17, %v1675_v42  ;;  %v624_v17 = vadd.f32 %v1650_v15, %v1675_v42  ;;  %v614_v15 = vadd.f32 %v1646_v13, %v1675_v42 }
 0x1a2   :  { %v1658_v20 = vpop.f32.mrf.mxu1  ;;  %v604_v13 = vadd.f32 %v1642_v10, %v1675_v42  ;;  %v966_v10 = vlaneseq }
 0x1a3   :  { %v766_v39 = vmax.f32 %v644_v5, 0.0  ;;  %v639_v12 = vadd.f32 %v1675_v42, %v1658_v20  ;;  %v629_v20 = vadd.f32 %v1675_v42, %v1656_v18  ;;  %v762_v18 = vmax.f32 %v624_v17, 0.0 }
 0x1a4   :  { %v1309_v21 = vpop.f32.mrf.mxu1  ;;  %vm1012_vm4 = vcmp.lt.s32.totalorder %v966_v10, 256 }
 0x1a5   :  { %v654_v61 = vadd.f32 %v1309_v21, %v1675_v42 }
 0x1a6   :  { %v648_v22 = vpop.f32.mrf.mxu1 }
 0x1a7   :  { %v768_v1 = vmax.f32 %v654_v61, 0.0  ;;  %v649_v2 = vadd.f32 %v1675_v42, %v648_v22 }
 0x1a8   :  { %v1312_v23 = vpop.f32.mrf.mxu1 }
 0x1a9   :  { %v664_v53 = vadd.f32 %v1312_v23, %v1675_v42  ;;  %v767_v6 = vmax.f32 %v649_v2, 0.0  ;;  %v765_v23 = vmax.f32 %v639_v12, 0.0 }
 0x1aa   :  { %v658_v24 = vpop.f32.mrf.mxu1 }
 0x1ab   :  { %v770_v57 = vmax.f32 %v664_v53, 0.0  ;;  %v659_v58 = vadd.f32 %v1675_v42, %v658_v24 }
 0x1ac   :  { %v1315_v25 = vpop.f32.mrf.mxu1 }
 0x1ad   :  { %v674_v43 = vadd.f32 %v1315_v25, %v1675_v42  ;;  %v769_v62 = vmax.f32 %v659_v58, 0.0 }
 0x1ae   :  { %v668_v26 = vpop.f32.mrf.mxu1 }
 0x1af   :  { %v772_v49 = vmax.f32 %v674_v43, 0.0  ;;  %v669_v50 = vadd.f32 %v1675_v42, %v668_v26  ;;  %v764_v26 = vmax.f32 %v634_v19, 0.0 }
 0x1b0   :  { %v1660_v27 = vpop.f32.mrf.mxu1 }
 0x1b1   :  { %v771_v54 = vmax.f32 %v669_v50, 0.0 }
 0x1b2   :  { %v1662_v28 = vpop.f32.mrf.mxu1 }
 0x1b4   :  { %v1664_v29 = vpop.f32.mrf.mxu1 }
 0x1b6   :  { %v1666_v30 = vpop.f32.mrf.mxu1 }
 0x1b7   :  { %v689_v43 = vadd.f32 %v1675_v42, %v1666_v30 }
 0x1b8   :  { %v1668_v31 = vpop.f32.mrf.mxu1 }
 0x1ba   :  { %v1670_v32 = vpop.f32.mrf.mxu1 }
 0x1bc   :  { %v1327_v33 = vpop.f32.mrf.mxu1 }
 0x1bd   :  { %v714_v21 = vadd.f32 %v1327_v33, %v1675_v42  ;;  %v704_v33 = vadd.f32 %v1668_v31, %v1675_v42  ;;  %v619_v31 = vadd.f32 %v1675_v42, %v1652_v16  ;;  %v760_v16 = vmax.f32 %v614_v15, 0.0 }
 0x1be   :  { %v708_v34 = vpop.f32.mrf.mxu1 }
 0x1bf   :  { %v780_v24 = vmax.f32 %v714_v21, 0.0  ;;  %v709_v25 = vadd.f32 %v1675_v42, %v708_v34  ;;  %v763_v34 = vmax.f32 %v629_v20, 0.0 }
 0x1c0   :  { %v1330_v35 = vpop.f32.mrf.mxu1 }
 0x1c1   :  { %v724_v3 = vadd.f32 %v1330_v35, %v1675_v42  ;;  %v779_v35 = vmax.f32 %v709_v25, 0.0 }
 0x1c2   :  { %v718_v36 = vpop.f32.mrf.mxu1 }
 0x1c3   :  { %v782_v7 = vmax.f32 %v724_v3, 0.0  ;;  %v719_v8 = vadd.f32 %v1675_v42, %v718_v36  ;;  %v778_v36 = vmax.f32 %v704_v33, 0.0 }
 0x1c4   :  { %v1333_v37 = vpop.f32.mrf.mxu1 }
 0x1c5   :  { %v734_v59 = vadd.f32 %v1333_v37, %v1675_v42  ;;  %v781_v22 = vmax.f32 %v719_v8, 0.0  ;;  %v699_v37 = vadd.f32 %v1675_v42, %v1670_v32  ;;  %v761_v32 = vmax.f32 %v619_v31, 0.0 }
 0x1c6   :  { %v728_v38 = vpop.f32.mrf.mxu1 }
 0x1c7   :  { %v784_v63 = vmax.f32 %v734_v59, 0.0  ;;  %v729_v0 = vadd.f32 %v1675_v42, %v728_v38  ;;  %v694_v38 = vadd.f32 %v1664_v29, %v1675_v42  ;;  %v609_v29 = vadd.f32 %v1675_v42, %v1648_v14 }
 0x1c8   :  { %v1336_v40 = vpop.f32.mrf.mxu1  ;;  %v758_v14 = vmax.f32 %v604_v13, 0.0 }
 0x1c9   :  { %v744_v51 = vadd.f32 %v1336_v40, %v1675_v42  ;;  %v783_v4 = vmax.f32 %v729_v0, 0.0  ;;  %v777_v40 = vmax.f32 %v699_v37, 0.0  ;;  %v759_v30 = vmax.f32 %v609_v29, 0.0 }
 0x1ca   :  { %v738_v41 = vpop.f32.mrf.mxu1  ;;  %v1375_v0 = vmov 1966171168  }
 0x1cb   :  { %v786_v55 = vmax.f32 %v744_v51, 0.0  ;;  %v739_v56 = vadd.f32 %v1675_v42, %v738_v41  ;;  %v776_v41 = vmax.f32 %v694_v38, 0.0  ;;  %v964_v51 = vpop.permute.xlu0 %963 }
 0x1cc   :  { %v1339_v44 = vpop.f32.mrf.mxu1 }
 0x1cd   :  { %v754_v45 = vadd.f32 %v1339_v44, %v1675_v42  ;;  %v785_v60 = vmax.f32 %v739_v56, 0.0  ;;  %v684_v44 = vadd.f32 %v1660_v27, %v1675_v42  ;;  %v599_v27 = vadd.f32 %v1675_v42, %v1644_v11 }
 0x1ce   :  { %v748_v46 = vpop.f32.mrf.mxu1 }
 0x1cf   :  { %v788_v47 = vmax.f32 %v754_v45, 0.0  ;;  %v749_v48 = vadd.f32 %v1675_v42, %v748_v46  ;;  %v775_v45 = vmax.f32 %v689_v43, 0.0  ;;  %v774_v46 = vmax.f32 %v684_v44, 0.0 }
 0x1d1   :  { %v787_v52 = vmax.f32 %v749_v48, 0.0  ;;  %1198 = vmatprep.subr.msk.mxu0 %vm435_vm1, %v788_v47  ;;  %v679_v47 = vadd.f32 %v1675_v42, %v1662_v28  ;;  %v967_v28 = vshrl.u32 %v966_v10, 7 }
 0x1d2   :  { %1199 = vmatpush3.xpose.msk.msra.mxu0 %vm435_vm1, %v772_v49  ;;  %v757_v49 = vmax.f32 %v599_v27, 0.0 }
 0x1d3   :  { %1200 = vmatprep.subr.msk.mxu0 %vm435_vm1, %v787_v52  ;;  %v773_v48 = vmax.f32 %v679_v47, 0.0  ;;  %v968_v50 = vsub.s32 0, %v967_v28 }
 0x1d5   :  { %v969_v52 = vrot.slane %v964_v51, %v968_v50 }
 0x1d6   :  { %1201 = vmatpush3.xpose.msk.msra.mxu0 %vm435_vm1, %v771_v54 }
 0x1d7   :  { %1202 = vmatprep.subr.msk.mxu0 %vm435_vm1, %v786_v55 }
 0x1da   :  { %1203 = vmatpush3.xpose.msk.msra.mxu0 %vm435_vm1, %v770_v57 }
 0x1db   :  { %1204 = vmatprep.subr.msk.mxu0 %vm435_vm1, %v785_v60 }
 0x1de   :  { %1205 = vmatpush3.xpose.msk.msra.mxu0 %vm435_vm1, %v769_v62 }
 0x1df   :  { %1206 = vmatprep.subr.msk.mxu0 %vm435_vm1, %v784_v63 }
 0x1e2   :  { %1207 = vmatpush3.xpose.msk.msra.mxu0 %vm435_vm1, %v768_v1  ;;  %v996_v1 = vunpack.c.l.s4 %v1375_v0 }
 0x1e3   :  { %1208 = vmatprep.subr.msk.mxu0 %vm435_vm1, %v783_v4 }
 0x1e4   :  { %v997_v3 = vunpack.c.0.s8 %v996_v1 }
 0x1e6   :  { %1209 = vmatpush3.xpose.msk.msra.mxu0 %vm435_vm1, %v767_v6 }
 0x1e7   :  { %1210 = vmatprep.subr.msk.mxu0 %vm435_vm1, %v782_v7  ;;  %v1000_v7 = vsub.s32 %v997_v3, %v967_v28 }
 0x1ea   :  { %1211 = vmatpush3.xpose.msk.msra.mxu0 %vm435_vm1, %v766_v39 }
 0x1eb   :  { %1212 = vmatprep.subr.msk.mxu0 %vm435_vm1, %v781_v22 }
 0x1ee   :  { %1213 = vmatpush3.xpose.msk.msra.mxu0 %vm435_vm1, %v765_v23 }
 0x1ef   :  { %1214 = vmatprep.subr.msk.mxu0 %vm435_vm1, %v780_v24 }
 0x1f2   :  { %1215 = vmatpush3.xpose.msk.msra.mxu0 %vm435_vm1, %v764_v26 }
 0x1f3   :  { %1216 = vmatprep.subr.msk.mxu0 %vm435_vm1, %v779_v35 }
 0x1f6   :  { %1217 = vmatpush3.xpose.msk.msra.mxu0 %vm435_vm1, %v763_v34 }
 0x1f7   :  { %1218 = vmatprep.subr.msk.mxu0 %vm435_vm1, %v778_v36 }
 0x1fa   :  { %1219 = vmatpush3.xpose.msk.msra.mxu0 %vm435_vm1, %v762_v18 }
 0x1fb   :  { %1220 = vmatprep.subr.msk.mxu0 %vm435_vm1, %v777_v40 }
 0x1fe   :  { %1221 = vmatpush3.xpose.msk.msra.mxu0 %vm435_vm1, %v761_v32 }
 0x1ff   :  { %1222 = vmatprep.subr.msk.mxu0 %vm435_vm1, %v776_v41 }
 0x202   :  { %1223 = vmatpush3.xpose.msk.msra.mxu0 %vm435_vm1, %v760_v16 }
 0x203   :  { %1224 = vmatprep.subr.msk.mxu0 %vm435_vm1, %v775_v45 }
 0x206   :  { %1225 = vmatpush3.xpose.msk.msra.mxu0 %vm435_vm1, %v759_v30 }
 0x207   :  { %1226 = vmatprep.subr.msk.mxu0 %vm435_vm1, %v774_v46 }
 0x20a   :  { %1227 = vmatpush3.xpose.msk.msra.mxu0 %vm435_vm1, %v758_v14 }
 0x20b   :  { %1228 = vmatprep.subr.msk.mxu0 %vm435_vm1, %v773_v48 }
 0x20e   :  { %1229 = vmatpush3.xpose.msk.msra.mxu0 %vm435_vm1, %v757_v49 }
 0x211   :  { %1231 = vmatmul.mubr.msk.f32.vlgmr.msra.gmra.mxu0 %vm435_vm1, %v1638_v9 }
 0x2d1   :  { %v955_v53 = vpop.f32.mrf.mxu0 }
 0x2d2   :  { %v970_v54 = vadd.f32 %v969_v52, %v955_v53 }
 0x2d3   :  { %v957_v55 = vpop.f32.mrf.mxu0 }
 0x2d4   :  { %v972_v11 = vand.u32 2147483647, %v970_v54  ;;  %v971_v42 = vadd.f32 %v969_v52, %v957_v55  ;;  %vm980_vm2 = vcmp.ge.f32.partialorder %v970_v54, 0.0 }
 0x2d6   :  { %v974_v56 = vsub.f32 0.0, %v972_v11  ;;  %v973_v57 = vand.u32 2147483647, %v971_v42  ;;  %vm981_vm3 = vcmp.ge.f32.partialorder %v971_v42, 0.0 }
 0x2d8   :  { %v976_v58 = vmul.f32 1.442695, %v974_v56  ;;  %v975_v59 = vsub.f32 0.0, %v973_v57 }
 0x2da   :  { %1344 = vpow2.f32 %v976_v58  ;;  %v978_v60 = vmul.f32 1.442695, %v975_v59 }
 0x2dc   :  { %1346 = vpow2.f32 %v978_v60 }
 0x2e7   :  { %v1345_v61 = vpop.eup %1344 }
 0x2e8   :  { %v982_v62 = vadd.f32 1.0, %v1345_v61 }
 0x2e9   :  { %v1347_v9 = vpop.eup %1346 }
 0x2ea   :  { %1348 = vrcp.f32 %v982_v62  ;;  %v983_v63 = vadd.f32 1.0, %v1347_v9 }
 0x2ec   :  { %1350 = vrcp.f32 %v983_v63 }
 0x2f7   :  { %v1349_v2 = vpop.eup %1348 }
 0x2f8   :  { %v988_v4 = vmul.f32 %v1349_v2, %v1345_v61 }
 0x2f9   :  { %v1351_v5 = vpop.eup %1350 }
 0x2fa   :  { %v989_v6 = vmul.f32 %v1351_v5, %v1347_v9  ;;  %v990_v8 = vsel %vm980_vm2, %v1349_v2, %v988_v4 }
 0x2fc   :  { %v991_v39 = vsel %vm981_vm3, %v1351_v5, %v989_v6 }
 0x2fd   :  { %v994_v12 = vcombine.low %v990_v8, %v991_v39 }
 0x2ff   :  { %v1001_v21 = vrot.slane %v994_v12, %v1000_v7 }
 0x301   :  { %v1008_v22 = vrot.slane %v1001_v21, %v1000_v7 }
 0x303   :  { %1014 = vst.msk [vmem:[#allocation3] sm:$0x3] %vm1012_vm4, %v1008_v22 }
 0x304   :  { %1363 = shalt.err (!%p1360_p4)
}
 0x305   :  { %1024 = dma.vmem_to_hbm [thread:$0]  %s1022_s29, 32, %s1768_s7, [#allocation4]  }
 0x306   :  { %1372 = dma.done.wait [#allocation4], 32  }
 0x307   :  { %1373 = vsyncadd [#allocation4], 4294967264 }
 0x308   :  { %1028 = vsyncpa [#allocation4], 1 }

</bundles_post_ra>
